<compile_context>
chip_gen: v6e
topology: v6e:2x2x1
jax: 0.10.0
libtpu: 0.0.40
codegen_flags: <defaults>
</compile_context>

<pallas_src>
import jax
import jax.numpy as jnp
from jax.experimental import pallas as pl
from jax.experimental.pallas import tpu as pltpu

_LANES = 128          # lane width: exactly one vreg lane extent -> unmasked stores
_MAX_BLOCK_ROWS = 1024  # 1024 x 128 x 4B = 512 KiB per block (fits all VMEM budgets)


def _round_up(n: int, m: int) -> int:
    return ((n + m - 1) // m) * m


def recu_kernel(x_ref, o_ref):
    """Elementwise step function on one (block_rows, 128) VMEM tile."""
    x = x_ref[...]
    o_ref[...] = jnp.where(x >= 0, jnp.ones_like(x), jnp.zeros_like(x))


def recu(x):
    """ReCU forward: where(x >= 0, 1, 0), any shape / float dtype."""
    orig_shape = x.shape
    orig_dtype = x.dtype

    flat = x.reshape(-1)
    n = flat.shape[0]

    # Lane-dense 2-D slab: last dim = 128, rows padded so the block tiles evenly.
    rows = -(-n // _LANES)
    block_rows = min(_MAX_BLOCK_ROWS, _round_up(max(rows, 1), 8))
    rows_padded = _round_up(max(rows, 1), block_rows)
    padded_n = rows_padded * _LANES
    if padded_n != n:
        flat = jnp.pad(flat, (0, padded_n - n))
    x2d = flat.reshape(rows_padded, _LANES)

    grid = (rows_padded // block_rows,)

    out2d = pl.pallas_call(
        recu_kernel,
        out_shape=jax.ShapeDtypeStruct((rows_padded, _LANES), orig_dtype),
        grid=grid,
        in_specs=[pl.BlockSpec((block_rows, _LANES), lambda i: (i, 0))],
        out_specs=pl.BlockSpec((block_rows, _LANES), lambda i: (i, 0)),
        compiler_params=pltpu.CompilerParams(
            dimension_semantics=("parallel",),
        ),
    )(x2d)

    return out2d.reshape(-1)[:n].reshape(orig_shape)


def _reference(x):
    return jnp.where(x >= 0, jnp.ones_like(x), jnp.zeros_like(x))


if __name__ == "__main__":
    key = jax.random.PRNGKey(0)
    k1, k2 = jax.random.split(key)

    recu_jit = jax.jit(recu)

    # Small shape consistent with an activation module: (batch=2, C=4, H=16, W=16).
    x = jax.random.normal(k1, (2, 4, 16, 16), jnp.float32)
    x = x.at[0, 0, 0, 0].set(0.0)  # exercise the x == 0 boundary (maps to 1)
    out = jax.block_until_ready(recu_jit(x))
    assert out.shape == x.shape
    assert out.dtype == x.dtype
    assert jnp.array_equal(out, _reference(x))

    # Ragged shape to exercise the padding / slicing path.
    y = jax.random.normal(k2, (3, 5, 7), jnp.float32)
    out_y = jax.block_until_ready(recu_jit(y))
    assert out_y.shape == y.shape
    assert jnp.array_equal(out_y, _reference(y))

    print("KERNEL_OK")
</pallas_src>

<mosaic_0001>
module attributes {stable_mosaic.version = 11 : i64} {
  func.func @recu_kernel(%arg0: i32, %arg1: memref<16x128xf32, #tpu.memory_space<vmem>>, %arg2: memref<16x128xf32, #tpu.memory_space<vmem>>) attributes {dimension_semantics = [#tpu.dimension_semantics<parallel>], iteration_bounds = array<i64: 1>, scalar_prefetch = 0 : i64, scratch_operands = 0 : i64, tpu.core_type = #tpu.core_type<tc>, window_params = [{transform_indices = @transform_0, window_bounds = array<i64: 16, 128>}, {transform_indices = @transform_1, window_bounds = array<i64: 16, 128>}]} {
    %c0 = arith.constant 0 : index
    %c0_0 = arith.constant 0 : index
    %0 = vector.load %arg1[%c0, %c0_0] : memref<16x128xf32, #tpu.memory_space<vmem>>, vector<16x128xf32>
    %cst = arith.constant 0.000000e+00 : f32
    %1 = vector.broadcast %cst : f32 to vector<16x128xf32>
    %2 = arith.cmpf oge, %0, %1 : vector<16x128xf32>
    %cst_1 = arith.constant 1.000000e+00 : f32
    %3 = vector.broadcast %cst_1 : f32 to vector<16x128xf32>
    %cst_2 = arith.constant 0.000000e+00 : f32
    %4 = vector.broadcast %cst_2 : f32 to vector<16x128xf32>
    %5 = arith.select %2, %3, %4 : vector<16x128xi1>, vector<16x128xf32>
    %c0_3 = arith.constant 0 : index
    %c0_4 = arith.constant 0 : index
    %6 = vector.load %arg2[%c0_3, %c0_4] : memref<16x128xf32, #tpu.memory_space<vmem>>, vector<16x128xf32>
    tpu.vector_store %arg2[%c0_3, %c0_4], %5 {strides = array<i32>} : memref<16x128xf32, #tpu.memory_space<vmem>>, vector<16x128xf32>,
    return
  }
  func.func @transform_0(%arg0: i32) -> (i32, i32) {
    %c0_i32 = arith.constant 0 : i32
    %c0_i32_0 = arith.constant 0 : i32
    return %arg0, %c0_i32 : i32, i32
  }
  func.func @transform_1(%arg0: i32) -> (i32, i32) {
    %c0_i32 = arith.constant 0 : i32
    %c0_i32_0 = arith.constant 0 : i32
    return %arg0, %c0_i32 : i32, i32
  }
}

</mosaic_0001>

<bundles_post_ra>
// kernel: recu.1
= control target key start
LH: loop header
LB: loop body
LE: loop exit
PB: predicated region body
PF: predicated region fallthrough
CT: control target
= control target key end

     0   :  { %v21_v2 = vmov 0.0   ;;  %s44_s0 = inlined_call_operand.vmem [shape: f32[16,128], index: 0, kind: input, shape index: {}]   ;;  %s45_s1 = inlined_call_operand.vmem [shape: f32[16,128], index: 1, kind: output, shape index: {}]  }
   0x1   :  { %v8_v0 = vld [vmem:[%s44_s0] sm:$0xff]  ;;  %v9_v1 = vld [vmem:[%s44_s0 + $0x8] sm:$0xff] }
   0x2   :  { %vm10_vm0 = vcmp.ge.f32.partialorder %v8_v0, 0.0  ;;  %vm11_vm1 = vcmp.ge.f32.partialorder %v9_v1, 0.0 }
   0x3   :  { %v12_v3 = vsel %vm10_vm0, 1.0, %v21_v2  ;;  %v13_v4 = vsel %vm11_vm1, 1.0, %v21_v2 }
   0x4   :  { %14 = vst [vmem:[%s45_s1] sm:$0xff] %v12_v3  ;;  %15 = vst [vmem:[%s45_s1 + $0x8] sm:$0xff] %v13_v4 }

</bundles_post_ra>
